<compile_context>
chip_gen: v5e
topology: v5e:2x2
jax: 0.10.0
libtpu: 0.0.40
codegen_flags: <defaults>
</compile_context>

<pallas_src>
import jax
import jax.numpy as jnp
from jax.experimental import pallas as pl
from jax.experimental.pallas import tpu as pltpu


def _mlp_kernel(x_ref, w1_ref, b1_ref, w2_ref, b2_ref, o_ref):
    # x: (TB, F) compute dtype; w1: (F, H); b1: (1, H) f32; w2: (H, O); b2: (1, O) f32
    x = x_ref[...]

    # hidden = tanh(x @ W1^T + b1): MXU matmul, f32 accumulation; bias + tanh in f32
    h = jnp.dot(x, w1_ref[...], preferred_element_type=jnp.float32) + b1_ref[...]
    h = jnp.tanh(h)                       # f32 EUP math (v5e has no bf16 VPU/EUP)

    # predict = h @ W2^T + b2: cast activation to the weight compute dtype for the MXU
    h = h.astype(w2_ref.dtype)
    y = jnp.dot(h, w2_ref[...], preferred_element_type=jnp.float32) + b2_ref[...]

    o_ref[...] = y.astype(o_ref.dtype)


def net_forward(x, w1, b1, w2, b2, *, block_b=None, compute_dtype=jnp.bfloat16,
                vmem_budget_bytes=24 * (1 << 20)):
    """x: (B, F); w1: (H, F); b1: (H,); w2: (O, H); b2: (O,)  (PyTorch Linear layout)."""
    B, F = x.shape
    H = w1.shape[0]
    O = w2.shape[0]
    out_dtype = x.dtype

    # One-time layout/dtype prep in the wrapper (fuses under jit):
    #   pre-transposed weights -> canonical MXU feed; bf16 operands halve HBM/VMEM traffic.
    x_in = x.astype(compute_dtype)
    w1t = w1.T.astype(compute_dtype)                     # (F, H)
    w2t = w2.T.astype(compute_dtype)                     # (H, O)
    b1_2d = b1.reshape(1, H).astype(jnp.float32)
    b2_2d = b2.reshape(1, O).astype(jnp.float32)

    cbytes = jnp.dtype(compute_dtype).itemsize
    obytes = jnp.dtype(out_dtype).itemsize
    resident_bytes = (F * H + H * O) * cbytes + (H + O) * 4   # weights (compute) + biases (f32)
    row_bytes = F * cbytes + O * obytes                       # streamed bytes per batch row

    if block_b is None:
        # Largest multiple-of-8 divisor of B such that double-buffered x/out tiles plus the
        # resident weights fit the VMEM budget; capped at B//2 so v7x's two TensorCores
        # both get grid steps ("parallel" batch axis).
        cap = max(8, (vmem_budget_bytes - resident_bytes) // (2 * row_bytes))
        cap = min(cap, B)
        if B >= 16 and B % 2 == 0:
            cap = min(cap, B // 2)
        tb = (cap // 8) * 8
        while tb >= 8:
            if B % tb == 0:
                block_b = tb
                break
            tb -= 8
        if block_b is None:
            # Fallback: one full-array tile (legal since dims equal the array dims).
            # Note: for huge B*F this can exceed VMEM -> compile-time failure, not silent
            # wrong results.
            block_b = B
    assert B % block_b == 0, "batch must be divisible by the batch tile"
    grid = (B // block_b,)

    step_bytes = block_b * row_bytes
    vmem_limit = int(min(64 << 20,
                         max(16 << 20, resident_bytes + 4 * step_bytes + (2 << 20))))

    cost = pl.CostEstimate(
        flops=2 * B * (F * H + H * O),
        transcendentals=B * H,
        bytes_accessed=B * F * cbytes + resident_bytes + B * O * obytes,
    )

    return pl.pallas_call(
        _mlp_kernel,
        out_shape=jax.ShapeDtypeStruct((B, O), out_dtype),
        grid=grid,
        in_specs=[
            pl.BlockSpec((block_b, F), lambda i: (i, 0)),   # x tiles stream over batch
            pl.BlockSpec((F, H),       lambda i: (0, 0)),   # W1^T VMEM-resident
            pl.BlockSpec((1, H),       lambda i: (0, 0)),   # b1 VMEM-resident
            pl.BlockSpec((H, O),       lambda i: (0, 0)),   # W2^T VMEM-resident
            pl.BlockSpec((1, O),       lambda i: (0, 0)),   # b2 VMEM-resident
        ],
        out_specs=pl.BlockSpec((block_b, O), lambda i: (i, 0)),  # unpadded (B, O) writeback
        compiler_params=pltpu.CompilerParams(
            dimension_semantics=("parallel",),   # shard batch tiles across TCs on v7x
            vmem_limit_bytes=vmem_limit,
        ),
        cost_estimate=cost,
    )(x_in, w1t, b1_2d, w2t, b2_2d)


if __name__ == "__main__":
    # Module hyperparameters (small, consistent with Net(n_feature, n_hidden, n_output))
    batch, n_feature, n_hidden, n_output = 32, 16, 32, 4

    key = jax.random.PRNGKey(0)
    kx, kw1, kb1, kw2, kb2 = jax.random.split(key, 5)

    x = jax.random.normal(kx, (batch, n_feature), dtype=jnp.float32)
    # PyTorch Linear weight layout: (out_features, in_features)
    w1 = jax.random.normal(kw1, (n_hidden, n_feature), dtype=jnp.float32) * 0.1
    b1 = jax.random.normal(kb1, (n_hidden,), dtype=jnp.float32) * 0.1
    w2 = jax.random.normal(kw2, (n_output, n_hidden), dtype=jnp.float32) * 0.1
    b2 = jax.random.normal(kb2, (n_output,), dtype=jnp.float32) * 0.1

    # Default path: bf16 MXU operands, auto block_b (=16 here -> grid=(2,), 2-core friendly)
    out = jax.block_until_ready(net_forward(x, w1, b1, w2, b2))

    # Pure-JAX f32 reference
    ref = jnp.tanh(x @ w1.T + b1) @ w2.T + b2
    assert out.shape == (batch, n_output)
    # Tolerance reflects bf16 rounding of the MXU operands (accumulation is f32).
    assert jnp.allclose(out, ref, atol=3e-2, rtol=3e-2)

    # Tight check of the same kernel with f32 operands (no bf16 rounding).
    out_f32 = jax.block_until_ready(
        net_forward(x, w1, b1, w2, b2, compute_dtype=jnp.float32))
    assert jnp.allclose(out_f32, ref, atol=1e-5, rtol=1e-5)

    print("KERNEL_OK")
</pallas_src>

<mosaic_0001>
module attributes {stable_mosaic.version = 11 : i64} {
  func.func @_mlp_kernel(%arg0: i32, %arg1: memref<16x16xbf16, #tpu.memory_space<vmem>>, %arg2: memref<16x32xbf16, #tpu.memory_space<vmem>>, %arg3: memref<1x32xf32, #tpu.memory_space<vmem>>, %arg4: memref<32x4xbf16, #tpu.memory_space<vmem>>, %arg5: memref<1x4xf32, #tpu.memory_space<vmem>>, %arg6: memref<16x4xf32, #tpu.memory_space<vmem>>) attributes {dimension_semantics = [#tpu.dimension_semantics<parallel>], iteration_bounds = array<i64: 2>, scalar_prefetch = 0 : i64, scratch_operands = 0 : i64, tpu.core_type = #tpu.core_type<tc>, window_params = [{transform_indices = @transform_0, window_bounds = array<i64: 16, 16>}, {pipeline_mode = #tpu.pipeline_mode<synchronous>, transform_indices = @transform_1, window_bounds = array<i64: 16, 32>}, {pipeline_mode = #tpu.pipeline_mode<synchronous>, transform_indices = @transform_2, window_bounds = array<i64: 1, 32>}, {pipeline_mode = #tpu.pipeline_mode<synchronous>, transform_indices = @transform_3, window_bounds = array<i64: 32, 4>}, {pipeline_mode = #tpu.pipeline_mode<synchronous>, transform_indices = @transform_4, window_bounds = array<i64: 1, 4>}, {transform_indices = @transform_5, window_bounds = array<i64: 16, 4>}]} {
    %c0 = arith.constant 0 : index
    %c0_0 = arith.constant 0 : index
    %0 = vector.load %arg1[%c0, %c0_0] : memref<16x16xbf16, #tpu.memory_space<vmem>>, vector<16x16xbf16>
    %c0_1 = arith.constant 0 : index
    %c0_2 = arith.constant 0 : index
    %1 = vector.load %arg2[%c0_1, %c0_2] : memref<16x32xbf16, #tpu.memory_space<vmem>>, vector<16x32xbf16>
    %cst = arith.constant dense<0.000000e+00> : vector<16x32xf32>
    %2 = tpu.matmul %0, %1, %cst {dimension_numbers = #tpu.dot_dimension_numbers<[1], [0], [0], [1], [0, 0, 1, 1], [], []>} : vector<16x16xbf16>, vector<16x32xbf16>, vector<16x32xf32> -> vector<16x32xf32>
    %c0_3 = arith.constant 0 : index
    %c0_4 = arith.constant 0 : index
    %3 = vector.load %arg3[%c0_3, %c0_4] : memref<1x32xf32, #tpu.memory_space<vmem>>, vector<1x32xf32>
    %4 = vector.broadcast %3 : vector<1x32xf32> to vector<16x32xf32>
    %5 = arith.addf %2, %4 : vector<16x32xf32>
    %6 = math.tanh %5 : vector<16x32xf32>
    %7 = arith.truncf %6 : vector<16x32xf32> to vector<16x32xbf16>
    %c0_5 = arith.constant 0 : index
    %c0_6 = arith.constant 0 : index
    %8 = vector.load %arg4[%c0_5, %c0_6] : memref<32x4xbf16, #tpu.memory_space<vmem>>, vector<32x4xbf16>
    %cst_7 = arith.constant dense<0.000000e+00> : vector<16x4xf32>
    %9 = tpu.matmul %7, %8, %cst_7 {dimension_numbers = #tpu.dot_dimension_numbers<[1], [0], [0], [1], [0, 0, 1, 1], [], []>} : vector<16x32xbf16>, vector<32x4xbf16>, vector<16x4xf32> -> vector<16x4xf32>
    %c0_8 = arith.constant 0 : index
    %c0_9 = arith.constant 0 : index
    %10 = vector.load %arg5[%c0_8, %c0_9] : memref<1x4xf32, #tpu.memory_space<vmem>>, vector<1x4xf32>
    %11 = vector.broadcast %10 : vector<1x4xf32> to vector<16x4xf32>
    %12 = arith.addf %9, %11 : vector<16x4xf32>
    %c0_10 = arith.constant 0 : index
    %c0_11 = arith.constant 0 : index
    %13 = vector.load %arg6[%c0_10, %c0_11] : memref<16x4xf32, #tpu.memory_space<vmem>>, vector<16x4xf32>
    tpu.vector_store %arg6[%c0_10, %c0_11], %12 {strides = array<i32>} : memref<16x4xf32, #tpu.memory_space<vmem>>, vector<16x4xf32>,
    return
  }
  func.func @transform_0(%arg0: i32) -> (i32, i32) {
    %c0_i32 = arith.constant 0 : i32
    %c0_i32_0 = arith.constant 0 : i32
    return %arg0, %c0_i32 : i32, i32
  }
  func.func @transform_1(%arg0: i32) -> (i32, i32) {
    %c0_i32 = arith.constant 0 : i32
    %c0_i32_0 = arith.constant 0 : i32
    %c0_i32_1 = arith.constant 0 : i32
    return %c0_i32, %c0_i32_0 : i32, i32
  }
  func.func @transform_2(%arg0: i32) -> (i32, i32) {
    %c0_i32 = arith.constant 0 : i32
    %c0_i32_0 = arith.constant 0 : i32
    %c0_i32_1 = arith.constant 0 : i32
    return %c0_i32, %c0_i32_0 : i32, i32
  }
  func.func @transform_3(%arg0: i32) -> (i32, i32) {
    %c0_i32 = arith.constant 0 : i32
    %c0_i32_0 = arith.constant 0 : i32
    %c0_i32_1 = arith.constant 0 : i32
    return %c0_i32, %c0_i32_0 : i32, i32
  }
  func.func @transform_4(%arg0: i32) -> (i32, i32) {
    %c0_i32 = arith.constant 0 : i32
    %c0_i32_0 = arith.constant 0 : i32
    %c0_i32_1 = arith.constant 0 : i32
    return %c0_i32, %c0_i32_0 : i32, i32
  }
  func.func @transform_5(%arg0: i32) -> (i32, i32) {
    %c0_i32 = arith.constant 0 : i32
    %c0_i32_0 = arith.constant 0 : i32
    return %arg0, %c0_i32 : i32, i32
  }
}

</mosaic_0001>

<bundles_post_ra>
// kernel: tpu_custom_call.1
= control target key start
LH: loop header
LB: loop body
LE: loop exit
PB: predicated region body
PF: predicated region fallthrough
CT: control target
= control target key end

     0   :  { %s451_s18 = smov 0   ;;  %s483_s0 = inlined_call_operand.vmem [shape: bf16[32,16], index: 0, kind: input, shape index: {}]   ;;  %s484_s1 = inlined_call_operand.vmem [shape: bf16[16,32], index: 1, kind: input, shape index: {}]   ;;  %s485_s2 = inlined_call_operand.vmem [shape: f32[1,32], index: 2, kind: input, shape index: {}]   ;;  %s486_s3 = inlined_call_operand.vmem [shape: bf16[32,4], index: 3, kind: input, shape index: {}]   ;;  %s487_s4 = inlined_call_operand.vmem [shape: f32[1,4], index: 4, kind: input, shape index: {}]   ;;  %s488_s5 = inlined_call_operand.vmem [shape: f32[32,4], index: 5, kind: output, shape index: {}]  }
   0x1 LB: > { %s366_s19 = sadd.s32 4294967295, %s419_s18   ;;  %p370_p0 = scmp.ge.s32.totalorder %s419_s18, 1  ;;  %s419_s18 = sphi %s451_s18, %s15_s18  }
   0x2   : > { %p188_p1 = scmp.lt.s32.totalorder %s419_s18, 3 }
   0x4   : > { %p189_p2 = pnand %p370_p0, %p188_p1 }
   0x5   : > { %s371_s22 = sshll.u32 (!%p189_p2), %s366_s19, 1 }
   0x6   : > { %192 = sbr.rel (%p189_p2) target bundleno = 297 (0x129), region = 40  ;;  %p217_p3 = scmp.lt.s32.totalorder (!%p189_p2), %s371_s22, 3 }
   0xb   : > { %v396_v0 = vld [vmem:[%s484_s1] sm:$0xff]  ;;  %s490_s22 = smov (!%p217_p3, %s371_s22), 3  ;;  %vm248_vm0 = vcmask 130048   ;;  %v398_v2 = vld [vmem:[%s486_s3 + $0x8] sm:$0xff]  ;;  %vm289_vm1 = vcmask 261120   ;;  %vm307_vm2 = vcmask 31744  }
   0xc   : > { %259 = vmatpush.bf16.msra.mxu0 %v396_v0  ;;  %s372_s23 = sshll.u32 %s490_s22, 2  ;;  %299 = vmatpush.bf16.msra.mxu1 %v398_v2  ;;  %v397_v3 = vld [vmem:[%s486_s3] sm:$0xff]  ;;  %s374_s8 = sshll.u32 %s490_s22, 3 }
   0xd   : > { %s220_s26 = scalar_lea.vmem %s483_s0, %s372_s23  ;;  %v407_v5 = vld [vmem:[%s485_s2] ss:$0 sm:$0xff]  ;;  %s226_s13 = scalar_lea.vmem %s488_s5, %s374_s8 }
   0xe   : > { %v395_v1 = vld [vmem:[%s220_s26] sm:$0xff] }
   0xf   : > { %383 = vmatmul.msk.bf16.vlgmr.msra.gmra.mxu0 %vm248_vm0, %v395_v1  ;;  %v408_v12 = vld [vmem:[%s487_s4] ss:$0 sm:$0xff] }
  0x10   : > { %300 = vmatpush.bf16.msra.mxu1 %v397_v3 }
  0x8c   : > { %v261_v4 = vpop.f32.mrf.mxu0 }
  0x8d   : > { %v262_v6 = vadd.f32 %v407_v5, %v261_v4 }
  0x8f   : > { %409 = vtanh.f32 %v262_v6 }
  0x94   : > { %v263_v7 = vpop.f32.mrf.mxu0 }
  0x95   : > { %v264_v8 = vadd.f32 %v407_v5, %v263_v7  ;;  %v410_v9 = vpop.eup %409 }
  0x97   : > { %411 = vtanh.f32 %v264_v8 }
  0x9d   : > { %v412_v10 = vpop.eup %411 }
  0x9e   : > { %v268_v11 = vpack.c.bf16 %v412_v10, %v410_v9 }
  0xa0   : > { %392 = vmatmul.msk.bf16.vlgmr.msra.gmra.mxu1 %vm289_vm1, %v268_v11 }
 0x11d   : > { %v302_v13 = vpop.f32.mrf.mxu1 }
 0x11e   : > { %v303_v14 = vadd.f32 %v408_v12, %v302_v13 }
 0x120   : > { %308 = vst.msk [vmem:[%s226_s13] sm:$0xff] %vm307_vm2, %v303_v14 }
 0x125   : > { %v304_v15 = vpop.f32.mrf.mxu1 }
 0x126   : > { %v305_v16 = vadd.f32 %v408_v12, %v304_v15 }
 0x128   : > { %309 = vst.msk [vmem:[%s226_s13 + $0x8] sm:$0xff] %vm307_vm2, %v305_v16 }
 0x129 PF: > { %s15_s18 = sadd.s32 1, %s419_s18  }
 0x12a   : > { %p12_p4 = scmp.ge.s32.totalorder %s15_s18, 4  }
 0x12c   :  { %14 = sbr.rel (!%p12_p4) target bundleno = 1 (0x1), region = 70 }

</bundles_post_ra>
